<compile_context>
chip_gen: v5e
topology: v5e:2x2
jax: 0.10.0
libtpu: 0.0.40
codegen_flags: <defaults>
</compile_context>

<pallas_src>
import jax
import jax.numpy as jnp
from jax import lax
from jax.experimental import pallas as pl
from jax.experimental.pallas import tpu as pltpu


# Contract dim 0 of LHS with dim 0 of RHS:  (TK, TM) x (TK, F) -> (TM, F)  ==  A_tile^T @ H_tile
_TN_DIM_NUMBERS = (((0,), (0,)), ((), ()))


def _gcn_kernel(adj_ref, h_ref, w_t_ref, b_ref, out_ref, acc_ref):
    k = pl.program_id(1)

    @pl.when(k == 0)
    def _():
        acc_ref[...] = jnp.zeros_like(acc_ref)

    # adj_ref tile is (TK, TM): rows = source nodes, cols = destination nodes.
    # bf16 0/1 adjacency -> f32 is exact; accumulate agg tile in f32.
    adj_tile = adj_ref[...].astype(jnp.float32)
    acc_ref[...] += lax.dot_general(
        adj_tile, h_ref[...], _TN_DIM_NUMBERS,
        preferred_element_type=jnp.float32)

    @pl.when(k == pl.num_programs(1) - 1)
    def _():
        # Epilogue: linear layer + bias, single lane-dense store of the output tile.
        out = jnp.dot(acc_ref[...], w_t_ref[...], preferred_element_type=jnp.float32)
        out_ref[...] = (out + b_ref[...]).astype(out_ref.dtype)


def _round_up(x, m):
    return ((x + m - 1) // m) * m


def _pad2d(x, rows, cols):
    pr, pc = rows - x.shape[0], cols - x.shape[1]
    if pr == 0 and pc == 0:
        return x
    return jnp.pad(x, ((0, pr), (0, pc)))


def gcn_layer(adj, features, weight, bias, *, tm=256, tk=512):
    """Dense GCN layer forward.

    adj:      (N, N)  adj[s, d] = 1 iff edge s -> d   (NOT transposed on host)
    features: (N, in_features) float32
    weight:   (out_features, in_features) float32  (PyTorch nn.Linear layout)
    bias:     (out_features,) float32
    returns:  (N, out_features) float32
    """
    n, f_in = features.shape
    f_out = weight.shape[0]

    # Tile sizes: tm = destination-node (output-row) tile -> lane dim of the adj tile
    # (multiple of 128); tk = source-node reduction tile -> sublane dim (multiple of 16
    # for bf16 packing). Clamp for small graphs so padding stays modest.
    tm = min(tm, _round_up(n, 128))
    tk = min(tk, _round_up(n, 16))

    n_pad_m = _round_up(n, tm)         # destination rows -> output rows
    n_pad_k = _round_up(n, tk)         # source rows -> reduction extent
    f_out_pad = _round_up(f_out, 128)  # lane-dense output stores

    # bf16 adjacency (exact for 0/1), zero-padded to tile multiples.
    adj_p = _pad2d(adj.astype(jnp.bfloat16), n_pad_k, n_pad_m)
    h_p = _pad2d(features.astype(jnp.float32), n_pad_k, f_in)
    w_t_p = _pad2d(weight.astype(jnp.float32).T, f_in, f_out_pad)
    b_p = _pad2d(bias.astype(jnp.float32).reshape(1, f_out), 1, f_out_pad)

    grid = (n_pad_m // tm, n_pad_k // tk)

    cost = pl.CostEstimate(
        flops=2 * n * n * f_in + 2 * n * f_in * f_out,
        transcendentals=0,
        bytes_accessed=(adj_p.size * 2 + h_p.size * 4 + w_t_p.size * 4
                        + b_p.size * 4 + n_pad_m * f_out_pad * 4),
    )

    out_p = pl.pallas_call(
        _gcn_kernel,
        out_shape=jax.ShapeDtypeStruct((n_pad_m, f_out_pad), jnp.float32),
        grid_spec=pltpu.PrefetchScalarGridSpec(
            num_scalar_prefetch=0,
            grid=grid,
            in_specs=[
                # (tk, tm) adjacency tile: rows = source block k, cols = dest block i.
                pl.BlockSpec((tk, tm), lambda i, k: (k, i)),
                # (tk, f_in) feature tile: rows = source block k.
                pl.BlockSpec((tk, f_in), lambda i, k: (k, 0)),
                # Weights / bias: same block every step -> resident in VMEM, loaded once.
                pl.BlockSpec((f_in, f_out_pad), lambda i, k: (0, 0)),
                pl.BlockSpec((1, f_out_pad), lambda i, k: (0, 0)),
            ],
            out_specs=pl.BlockSpec((tm, f_out_pad), lambda i, k: (i, 0)),
            scratch_shapes=[pltpu.VMEM((tm, f_in), jnp.float32)],
        ),
        compiler_params=pltpu.CompilerParams(
            dimension_semantics=("parallel", "arbitrary"),
        ),
        cost_estimate=cost,
    )(adj_p, h_p, w_t_p, b_p)

    return out_p[:n, :f_out]


def _make_problem(key, n, f_in, f_out):
    k_adj, k_feat, k_w, k_b = jax.random.split(key, 4)
    # Random directed graph with self-loops, dense adjacency (s -> d).
    adj = (jax.random.uniform(k_adj, (n, n)) < 0.3).astype(jnp.float32)
    adj = jnp.maximum(adj, jnp.eye(n, dtype=jnp.float32))
    features = jax.random.normal(k_feat, (n, f_in), dtype=jnp.float32)
    bound = 1.0 / jnp.sqrt(f_in)
    weight = jax.random.uniform(k_w, (f_out, f_in), minval=-bound, maxval=bound)
    bias = jax.random.uniform(k_b, (f_out,), minval=-bound, maxval=bound)
    return adj, features, weight, bias


if __name__ == "__main__":
    key = jax.random.PRNGKey(0)
    k1, k2 = jax.random.split(key)

    # Case 1: small graph (single grid step), module-scale shapes.
    N, IN_FEATS, OUT_FEATS = 16, 32, 16
    adj, features, weight, bias = _make_problem(k1, N, IN_FEATS, OUT_FEATS)
    out = jax.block_until_ready(gcn_layer(adj, features, weight, bias))
    ref = (adj.T @ features) @ weight.T + bias
    assert out.shape == (N, OUT_FEATS)
    assert jnp.allclose(out, ref, atol=1e-4, rtol=1e-4)

    # Case 2: non-tile-multiple N with a multi-step reduction grid + padding path.
    N2, IN2, OUT2 = 300, 64, 48
    adj2, features2, weight2, bias2 = _make_problem(k2, N2, IN2, OUT2)
    out2 = jax.block_until_ready(
        gcn_layer(adj2, features2, weight2, bias2, tm=128, tk=128))
    ref2 = (adj2.T @ features2) @ weight2.T + bias2
    assert out2.shape == (N2, OUT2)
    assert jnp.allclose(out2, ref2, atol=1e-3, rtol=1e-3)

    print("KERNEL_OK")
</pallas_src>

<mosaic_0001>
module attributes {stable_mosaic.version = 11 : i64} {
  func.func @_gcn_kernel(%arg0: i32, %arg1: i32, %arg2: memref<16x128xbf16, #tpu.memory_space<vmem>>, %arg3: memref<16x32xf32, #tpu.memory_space<vmem>>, %arg4: memref<32x128xf32, #tpu.memory_space<vmem>>, %arg5: memref<1x128xf32, #tpu.memory_space<vmem>>, %arg6: memref<128x128xf32, #tpu.memory_space<vmem>>, %arg7: memref<128x32xf32, #tpu.memory_space<vmem>>) attributes {dimension_semantics = [#tpu.dimension_semantics<parallel>, #tpu.dimension_semantics<arbitrary>], iteration_bounds = array<i64: 1, 1>, scalar_prefetch = 0 : i64, scratch_operands = 1 : i64, tpu.core_type = #tpu.core_type<tc>, window_params = [{transform_indices = @transform_0, window_bounds = array<i64: 16, 128>}, {transform_indices = @transform_1, window_bounds = array<i64: 16, 32>}, {pipeline_mode = #tpu.pipeline_mode<synchronous>, transform_indices = @transform_2, window_bounds = array<i64: 32, 128>}, {pipeline_mode = #tpu.pipeline_mode<synchronous>, transform_indices = @transform_3, window_bounds = array<i64: 1, 128>}, {transform_indices = @transform_4, window_bounds = array<i64: 128, 128>}]} {
    %c0_i32 = arith.constant 0 : i32
    %0 = arith.cmpi eq, %arg1, %c0_i32 : i32
    %1 = arith.extui %0 : i1 to i32
    %c0_i32_0 = arith.constant 0 : i32
    %2 = arith.cmpi ne, %1, %c0_i32_0 : i32
    scf.if %2 {
      %cst_10 = arith.constant 0.000000e+00 : f32
      %13 = vector.broadcast %cst_10 : f32 to vector<128x32xf32>
      %c0_11 = arith.constant 0 : index
      %c0_12 = arith.constant 0 : index
      %14 = vector.load %arg7[%c0_11, %c0_12] : memref<128x32xf32, #tpu.memory_space<vmem>>, vector<128x32xf32>
      tpu.vector_store %arg7[%c0_11, %c0_12], %13 {strides = array<i32>} : memref<128x32xf32, #tpu.memory_space<vmem>>, vector<128x32xf32>,
    } else {
    }
    %c0 = arith.constant 0 : index
    %c0_1 = arith.constant 0 : index
    %3 = vector.load %arg2[%c0, %c0_1] : memref<16x128xbf16, #tpu.memory_space<vmem>>, vector<16x128xbf16>
    %4 = arith.extf %3 : vector<16x128xbf16> to vector<16x128xf32>
    %c0_2 = arith.constant 0 : index
    %c0_3 = arith.constant 0 : index
    %5 = vector.load %arg7[%c0_2, %c0_3] : memref<128x32xf32, #tpu.memory_space<vmem>>, vector<128x32xf32>
    %c0_4 = arith.constant 0 : index
    %c0_5 = arith.constant 0 : index
    %6 = vector.load %arg3[%c0_4, %c0_5] : memref<16x32xf32, #tpu.memory_space<vmem>>, vector<16x32xf32>
    %cst = arith.constant dense<0.000000e+00> : vector<128x32xf32>
    %7 = tpu.matmul %4, %6, %cst {dimension_numbers = #tpu.dot_dimension_numbers<[0], [0], [1], [1], [0, 1, 1, 1], [], []>} : vector<16x128xf32>, vector<16x32xf32>, vector<128x32xf32> -> vector<128x32xf32>
    %8 = arith.addf %5, %7 : vector<128x32xf32>
    %c0_6 = arith.constant 0 : index
    %c0_7 = arith.constant 0 : index
    %9 = vector.load %arg7[%c0_6, %c0_7] : memref<128x32xf32, #tpu.memory_space<vmem>>, vector<128x32xf32>
    tpu.vector_store %arg7[%c0_6, %c0_7], %8 {strides = array<i32>} : memref<128x32xf32, #tpu.memory_space<vmem>>, vector<128x32xf32>,
    %c0_i32_8 = arith.constant 0 : i32
    %10 = arith.cmpi eq, %arg1, %c0_i32_8 : i32
    %11 = arith.extui %10 : i1 to i32
    %c0_i32_9 = arith.constant 0 : i32
    %12 = arith.cmpi ne, %11, %c0_i32_9 : i32
    scf.if %12 {
      %c0_10 = arith.constant 0 : index
      %c0_11 = arith.constant 0 : index
      %13 = vector.load %arg7[%c0_10, %c0_11] : memref<128x32xf32, #tpu.memory_space<vmem>>, vector<128x32xf32>
      %c0_12 = arith.constant 0 : index
      %c0_13 = arith.constant 0 : index
      %14 = vector.load %arg4[%c0_12, %c0_13] : memref<32x128xf32, #tpu.memory_space<vmem>>, vector<32x128xf32>
      %cst_14 = arith.constant dense<0.000000e+00> : vector<128x128xf32>
      %15 = tpu.matmul %13, %14, %cst_14 {dimension_numbers = #tpu.dot_dimension_numbers<[1], [0], [0], [1], [0, 0, 1, 1], [], []>} : vector<128x32xf32>, vector<32x128xf32>, vector<128x128xf32> -> vector<128x128xf32>
      %c0_15 = arith.constant 0 : index
      %c0_16 = arith.constant 0 : index
      %16 = vector.load %arg5[%c0_15, %c0_16] : memref<1x128xf32, #tpu.memory_space<vmem>>, vector<1x128xf32>
      %17 = vector.broadcast %16 : vector<1x128xf32> to vector<128x128xf32>
      %18 = arith.addf %15, %17 : vector<128x128xf32>
      %c0_17 = arith.constant 0 : index
      %c0_18 = arith.constant 0 : index
      %19 = vector.load %arg6[%c0_17, %c0_18] : memref<128x128xf32, #tpu.memory_space<vmem>>, vector<128x128xf32>
      tpu.vector_store %arg6[%c0_17, %c0_18], %18 {strides = array<i32>} : memref<128x128xf32, #tpu.memory_space<vmem>>, vector<128x128xf32>,
    } else {
    }
    return
  }
  func.func @transform_0(%arg0: i32, %arg1: i32) -> (i32, i32) {
    %c0_i32 = arith.constant 0 : i32
    return %arg1, %arg0 : i32, i32
  }
  func.func @transform_1(%arg0: i32, %arg1: i32) -> (i32, i32) {
    %c0_i32 = arith.constant 0 : i32
    %c0_i32_0 = arith.constant 0 : i32
    return %arg1, %c0_i32 : i32, i32
  }
  func.func @transform_2(%arg0: i32, %arg1: i32) -> (i32, i32) {
    %c0_i32 = arith.constant 0 : i32
    %c0_i32_0 = arith.constant 0 : i32
    %c0_i32_1 = arith.constant 0 : i32
    return %c0_i32, %c0_i32_0 : i32, i32
  }
  func.func @transform_3(%arg0: i32, %arg1: i32) -> (i32, i32) {
    %c0_i32 = arith.constant 0 : i32
    %c0_i32_0 = arith.constant 0 : i32
    %c0_i32_1 = arith.constant 0 : i32
    return %c0_i32, %c0_i32_0 : i32, i32
  }
  func.func @transform_4(%arg0: i32, %arg1: i32) -> (i32, i32) {
    %c0_i32 = arith.constant 0 : i32
    %c0_i32_0 = arith.constant 0 : i32
    return %arg0, %c0_i32 : i32, i32
  }
}

</mosaic_0001>

<bundles_post_ra>
// kernel: tpu_custom_call.1
= control target key start
LH: loop header
LB: loop body
LE: loop exit
PB: predicated region body
PF: predicated region fallthrough
CT: control target
= control target key end

     0   :  { %9 = vsyncpa [#allocation4], 0  ;;  %s739_s0 = inlined_call_operand.hbm [shape: bf16[16,128], index: 0, kind: input, shape index: {}]   ;;  %s740_s1 = inlined_call_operand.hbm [shape: f32[16,32], index: 1, kind: input, shape index: {}]   ;;  %s741_s2 = inlined_call_operand.hbm [shape: f32[32,128], index: 2, kind: input, shape index: {}]   ;;  %s742_s3 = inlined_call_operand.vmem [shape: f32[1,128], index: 3, kind: input, shape index: {}]   ;;  %s743_s4 = inlined_call_operand.hbm [shape: f32[128,128], index: 4, kind: output, shape index: {}]  }
   0x1   :  { %10 = vsyncpa [#allocation7], 0  ;;  %s29_s17 = sshll.u32 %s740_s1, 4  ;;  %s30_s17 = int_to_ptr.hbm [resolvable:$true] %s29_s17 }
   0x2   :  { %11 = vsyncpa [#allocation5], 0  ;;  %s617_s18 = smov [#allocation6]   ;;  %s16_s22 = sshll.u32 %s739_s0, 4  ;;  %s17_s22 = int_to_ptr.hbm [resolvable:$true] %s16_s22 }
   0x3   :  { %s31_s19 = sshll.u32 %s617_s18, 4  ;;  %s618_s23 = smov 128   ;;  %s32_s19 = int_to_ptr.vmem [resolvable:$true] %s31_s19 }
   0x4   :  { %s619_s24 = smov 8   ;;  %s620_s25 = smov [#allocation3]  }
   0x5   :  { %37 = dma.hbm_to_vmem [thread:$0]  %s30_s17, 256, %s32_s19, [#allocation7], %s618_s23, %s618_s23, %s619_s24  }
   0x6   :  { %s18_s26 = sshll.u32 %s620_s25, 4  ;;  %s621_s1 = smov 64   ;;  %s19_s26 = int_to_ptr.vmem [resolvable:$true] %s18_s26 }
   0x7   :  { %s622_s27 = smov 4   ;;  %s42_s30 = sshll.u32 %s741_s2, 4  ;;  %s43_s30 = int_to_ptr.hbm [resolvable:$true] %s42_s30 }
   0x8   :  { %24 = dma.hbm_to_vmem [thread:$0]  %s17_s22, 128, %s19_s26, [#allocation4], %s621_s1, %s621_s1, %s622_s27  }
   0x9   :  { %s623_s5 = smov [#allocation8]  }
   0xa   :  { %s44_s0 = sshll.u32 %s623_s5, 4  ;;  %s45_s0 = int_to_ptr.vmem [resolvable:$true] %s44_s0 }
   0xb   :  { %50 = dma.hbm_to_vmem [thread:$0]  %s43_s30, 512, %s45_s0, [#allocation7], %s618_s23, %s618_s23, %s619_s24  }
   0xc   :  { %611 = dma.done.wait [#allocation4], 128  }
   0xd   :  { %612 = vsyncadd [#allocation4], 4294967168 }
   0xe   :  { %613 = dma.done.wait [#allocation7], 768  }
   0xf   :  { %614 = vsyncadd [#allocation7], 4294966528  ;;  %v496_v0 = vld [vmem:[#allocation3] sm:$0xff]   ;;  %v107_v1 = vld [vmem:[#allocation6 + $0x8] sm:$0xff]  ;;  %vm140_vm0 = vcmask 130048   ;;  %vm69_vm1 = vcmask 261120  }
  0x10   :  { %v106_v2 = vld [vmem:[#allocation6] sm:$0xff]  ;;  %v497_v3 = vunpack.c.l.bf16 %v496_v0  ;;  %203 = vmatpush.msra.mxu0 %v107_v1  ;;  %499 = vmatpush.msra.mxu3 %v107_v1  ;;  %v498_v4 = vunpack.c.h.bf16 %v496_v0  ;;  %v624_v16 = vmov 0.0   ;;  %v309_v19 = vld [vmem:[#allocation8 + $0x18] sm:$0xff]  ;;  %v307_v21 = vld [vmem:[#allocation8 + $0x8] sm:$0xff]  ;;  %s449_s10 = sshll.u32 %s743_s4, 4  ;;  %s450_s10 = int_to_ptr.hbm [resolvable:$true] %s449_s10 }
  0x11   :  { %70 = vst.msk [vmem:[#allocation2] sm:$0xff] %vm69_vm1, %v624_v16  ;;  %v308_v20 = vld [vmem:[#allocation8 + $0x10] sm:$0xff]  ;;  %374 = vmatpush.msra.mxu1 %v309_v19  ;;  %501 = vmatpush.msra.mxu2 %v309_v19  ;;  %v306_v22 = vld [vmem:[#allocation8] sm:$0xff] }
  0x12   :  { %108 = vxpose.xlu0.b32.start [1/2] (short) %v497_v3, 128  ;;  %204 = vmatpush.msra.mxu0 %v106_v2  ;;  %71 = vst.msk [vmem:[#allocation2 + $0x8] sm:$0xff] %vm69_vm1, %v624_v16 }
  0x13   :  { %500 = vmatpush.msra.mxu3 %v106_v2  ;;  %72 = vst.msk [vmem:[#allocation2 + $0x10] sm:$0xff] %vm69_vm1, %v624_v16  ;;  %375 = vmatpush.msra.mxu1 %v308_v20 }
  0x14   :  { %73 = vst.msk [vmem:[#allocation2 + $0x18] sm:$0xff] %vm69_vm1, %v624_v16  ;;  %502 = vmatpush.msra.mxu2 %v308_v20 }
  0x15   :  { %74 = vst.msk [vmem:[#allocation2 + $0x20] sm:$0xff] %vm69_vm1, %v624_v16  ;;  %376 = vmatpush.msra.mxu1 %v307_v21 }
  0x16   :  { %75 = vst.msk [vmem:[#allocation2 + $0x28] sm:$0xff] %vm69_vm1, %v624_v16  ;;  %503 = vmatpush.msra.mxu2 %v307_v21 }
  0x17   :  { %76 = vst.msk [vmem:[#allocation2 + $0x30] sm:$0xff] %vm69_vm1, %v624_v16  ;;  %377 = vmatpush.msra.mxu1 %v306_v22 }
  0x18   :  { %77 = vst.msk [vmem:[#allocation2 + $0x38] sm:$0xff] %vm69_vm1, %v624_v16  ;;  %504 = vmatpush.msra.mxu2 %v306_v22  ;;  %v90_v26 = vld [vmem:[#allocation2] sm:$0xff] }
  0x19   :  { %78 = vst.msk [vmem:[#allocation2 + $0x40] sm:$0xff] %vm69_vm1, %v624_v16  ;;  %v91_v29 = vld [vmem:[#allocation2 + $0x8] sm:$0xff] }
  0x1a   :  { %109 = vxpose.xlu0.b32.end [2/2] (short) %v498_v4, 128  ;;  %79 = vst.msk [vmem:[#allocation2 + $0x48] sm:$0xff] %vm69_vm1, %v624_v16  ;;  %v92_v33 = vld [vmem:[#allocation2 + $0x10] sm:$0xff] }
  0x1b   :  { %80 = vst.msk [vmem:[#allocation2 + $0x50] sm:$0xff] %vm69_vm1, %v624_v16  ;;  %v93_v37 = vld [vmem:[#allocation2 + $0x18] sm:$0xff] }
  0x1c   :  { %81 = vst.msk [vmem:[#allocation2 + $0x58] sm:$0xff] %vm69_vm1, %v624_v16  ;;  %v94_v41 = vld [vmem:[#allocation2 + $0x20] sm:$0xff] }
  0x1d   :  { %82 = vst.msk [vmem:[#allocation2 + $0x60] sm:$0xff] %vm69_vm1, %v624_v16  ;;  %v95_v45 = vld [vmem:[#allocation2 + $0x28] sm:$0xff] }
  0x1e   :  { %83 = vst.msk [vmem:[#allocation2 + $0x68] sm:$0xff] %vm69_vm1, %v624_v16  ;;  %v96_v49 = vld [vmem:[#allocation2 + $0x30] sm:$0xff] }
  0x1f   :  { %84 = vst.msk [vmem:[#allocation2 + $0x70] sm:$0xff] %vm69_vm1, %v624_v16  ;;  %v97_v53 = vld [vmem:[#allocation2 + $0x38] sm:$0xff] }
  0x20   :  { %85 = vst.msk [vmem:[#allocation2 + $0x78] sm:$0xff] %vm69_vm1, %v624_v16  ;;  %v98_v57 = vld [vmem:[#allocation2 + $0x40] sm:$0xff] }
  0x21   :  { %v99_v62 = vld [vmem:[#allocation2 + $0x48] sm:$0xff] }
  0x22   :  { %v100_v1 = vld [vmem:[#allocation2 + $0x50] sm:$0xff] }
  0x27   :  { %v105_v21 = vld [vmem:[#allocation2 + $0x78] sm:$0xff] }
  0xb6   :  { %v124_v5 = vpop.trf.xlu0 }
  0xb7   :  { %463 = vmatmul.msk.f32.vlgmr.msra.gmra.mxu0 %vm140_vm0, %v124_v5  ;;  %v101_v5 = vld [vmem:[#allocation2 + $0x58] sm:$0xff] }
  0xbe   :  { %v125_v6 = vpop.trf.xlu0 }
  0xbf   :  { %464 = vmatmul.msk.f32.gmra.mxu0 %vm140_vm0, %v125_v6 }
  0xc6   :  { %v126_v7 = vpop.trf.xlu0 }
  0xc7   :  { %465 = vmatmul.msk.f32.gmra.mxu0 %vm140_vm0, %v126_v7 }
  0xce   :  { %v127_v8 = vpop.trf.xlu0 }
  0xcf   :  { %466 = vmatmul.msk.f32.gmra.mxu0 %vm140_vm0, %v127_v8 }
  0xd6   :  { %v128_v9 = vpop.trf.xlu0 }
  0xd7   :  { %467 = vmatmul.msk.f32.gmra.mxu0 %vm140_vm0, %v128_v9  ;;  %v102_v9 = vld [vmem:[#allocation2 + $0x60] sm:$0xff] }
  0xde   :  { %v129_v10 = vpop.trf.xlu0 }
  0xdf   :  { %468 = vmatmul.msk.f32.gmra.mxu0 %vm140_vm0, %v129_v10 }
  0xe6   :  { %v130_v11 = vpop.trf.xlu0 }
  0xe7   :  { %469 = vmatmul.msk.f32.gmra.mxu0 %vm140_vm0, %v130_v11 }
  0xee   :  { %v131_v12 = vpop.trf.xlu0 }
  0xef   :  { %470 = vmatmul.msk.f32.gmra.mxu0 %vm140_vm0, %v131_v12 }
  0xf6   :  { %v132_v13 = vpop.trf.xlu0 }
  0xf7   :  { %471 = vmatmul.msk.f32.gmra.mxu0 %vm140_vm0, %v132_v13  ;;  %v103_v13 = vld [vmem:[#allocation2 + $0x68] sm:$0xff] }
  0xfe   :  { %v133_v14 = vpop.trf.xlu0 }
  0xff   :  { %472 = vmatmul.msk.f32.vlgmr.msra.gmra.mxu3 %vm140_vm0, %v133_v14 }
 0x106   :  { %v134_v15 = vpop.trf.xlu0 }
 0x107   :  { %473 = vmatmul.msk.f32.gmra.mxu3 %vm140_vm0, %v134_v15 }
 0x10e   :  { %v135_v17 = vpop.trf.xlu0 }
 0x10f   :  { %474 = vmatmul.msk.f32.gmra.mxu3 %vm140_vm0, %v135_v17  ;;  %v104_v17 = vld [vmem:[#allocation2 + $0x70] sm:$0xff] }
 0x116   :  { %v136_v18 = vpop.trf.xlu0 }
 0x117   :  { %475 = vmatmul.msk.f32.gmra.mxu3 %vm140_vm0, %v136_v18 }
 0x11e   :  { %v137_v23 = vpop.trf.xlu0 }
 0x11f   :  { %476 = vmatmul.msk.f32.gmra.mxu3 %vm140_vm0, %v137_v23 }
 0x126   :  { %v138_v24 = vpop.trf.xlu0 }
 0x127   :  { %477 = vmatmul.msk.f32.gmra.mxu3 %vm140_vm0, %v138_v24 }
 0x12e   :  { %v139_v25 = vpop.trf.xlu0 }
 0x12f   :  { %478 = vmatmul.msk.f32.gmra.mxu3 %vm140_vm0, %v139_v25  ;;  %v514_v25 = vld [vmem:[%s742_s3] ss:$0 sm:$0xff]  ;;  %s625_s3 = smov [#allocation9]  }
 0x130   :  { %s447_s7 = sshll.u32 %s625_s3, 4  ;;  %s448_s7 = int_to_ptr.vmem [resolvable:$true] %s447_s7 }
 0x134   :  { %v206_v27 = vpop.f32.mrf.mxu0 }
 0x135   :  { %v254_v28 = vadd.f32 %v206_v27, %v90_v26 }
 0x137   :  { %271 = vst.msk [vmem:[#allocation2] sm:$0xff] %vm69_vm1, %v254_v28 }
 0x13c   :  { %v209_v30 = vpop.f32.mrf.mxu0 }
 0x13d   :  { %v255_v31 = vadd.f32 %v209_v30, %v91_v29 }
 0x13e   :  { %v290_v32 = vld [vmem:[#allocation2] sm:$0xff] }
 0x13f   :  { %272 = vst.msk [vmem:[#allocation2 + $0x8] sm:$0xff] %vm69_vm1, %v255_v31  ;;  %479 = vmatmul.msk.f32.vlgmr.msra.gmra.mxu1 %vm69_vm1, %v290_v32 }
 0x144   :  { %v212_v34 = vpop.f32.mrf.mxu0 }
 0x145   :  { %v256_v35 = vadd.f32 %v212_v34, %v92_v33 }
 0x146   :  { %v291_v36 = vld [vmem:[#allocation2 + $0x8] sm:$0xff] }
 0x147   :  { %273 = vst.msk [vmem:[#allocation2 + $0x10] sm:$0xff] %vm69_vm1, %v256_v35  ;;  %480 = vmatmul.msk.f32.gmra.mxu1 %vm69_vm1, %v291_v36 }
 0x14c   :  { %v215_v38 = vpop.f32.mrf.mxu0 }
 0x14d   :  { %v257_v39 = vadd.f32 %v215_v38, %v93_v37 }
 0x14e   :  { %v292_v40 = vld [vmem:[#allocation2 + $0x10] sm:$0xff] }
 0x14f   :  { %274 = vst.msk [vmem:[#allocation2 + $0x18] sm:$0xff] %vm69_vm1, %v257_v39  ;;  %481 = vmatmul.msk.f32.gmra.mxu1 %vm69_vm1, %v292_v40 }
 0x154   :  { %v218_v42 = vpop.f32.mrf.mxu0 }
 0x155   :  { %v258_v43 = vadd.f32 %v218_v42, %v94_v41 }
 0x156   :  { %v293_v44 = vld [vmem:[#allocation2 + $0x18] sm:$0xff] }
 0x157   :  { %275 = vst.msk [vmem:[#allocation2 + $0x20] sm:$0xff] %vm69_vm1, %v258_v43  ;;  %482 = vmatmul.msk.f32.gmra.mxu1 %vm69_vm1, %v293_v44 }
 0x15c   :  { %v221_v46 = vpop.f32.mrf.mxu0 }
 0x15d   :  { %v259_v47 = vadd.f32 %v221_v46, %v95_v45 }
 0x15e   :  { %v294_v48 = vld [vmem:[#allocation2 + $0x20] sm:$0xff] }
 0x15f   :  { %276 = vst.msk [vmem:[#allocation2 + $0x28] sm:$0xff] %vm69_vm1, %v259_v47  ;;  %483 = vmatmul.msk.f32.gmra.mxu1 %vm69_vm1, %v294_v48 }
 0x164   :  { %v224_v50 = vpop.f32.mrf.mxu0 }
 0x165   :  { %v260_v51 = vadd.f32 %v224_v50, %v96_v49 }
 0x166   :  { %v295_v52 = vld [vmem:[#allocation2 + $0x28] sm:$0xff] }
 0x167   :  { %277 = vst.msk [vmem:[#allocation2 + $0x30] sm:$0xff] %vm69_vm1, %v260_v51  ;;  %484 = vmatmul.msk.f32.gmra.mxu1 %vm69_vm1, %v295_v52 }
 0x16c   :  { %v227_v54 = vpop.f32.mrf.mxu0 }
 0x16d   :  { %v261_v55 = vadd.f32 %v227_v54, %v97_v53 }
 0x16e   :  { %v296_v56 = vld [vmem:[#allocation2 + $0x30] sm:$0xff] }
 0x16f   :  { %278 = vst.msk [vmem:[#allocation2 + $0x38] sm:$0xff] %vm69_vm1, %v261_v55  ;;  %485 = vmatmul.msk.f32.gmra.mxu1 %vm69_vm1, %v296_v56 }
 0x174   :  { %v230_v58 = vpop.f32.mrf.mxu0 }
 0x175   :  { %v262_v59 = vadd.f32 %v230_v58, %v98_v57 }
 0x176   :  { %v297_v60 = vld [vmem:[#allocation2 + $0x38] sm:$0xff] }
 0x177   :  { %279 = vst.msk [vmem:[#allocation2 + $0x40] sm:$0xff] %vm69_vm1, %v262_v59  ;;  %486 = vmatmul.msk.f32.gmra.mxu1 %vm69_vm1, %v297_v60 }
 0x17e   :  { %v298_v61 = vld [vmem:[#allocation2 + $0x40] sm:$0xff] }
 0x17f   :  { %487 = vmatmul.msk.f32.vlgmr.msra.gmra.mxu2 %vm69_vm1, %v298_v61 }
 0x182   :  { %v233_v63 = vpop.f32.mrf.mxu3 }
 0x183   :  { %v263_v0 = vadd.f32 %v233_v63, %v99_v62 }
 0x185   :  { %280 = vst.msk [vmem:[#allocation2 + $0x48] sm:$0xff] %vm69_vm1, %v263_v0 }
 0x18a   :  { %v236_v2 = vpop.f32.mrf.mxu3 }
 0x18b   :  { %v264_v3 = vadd.f32 %v236_v2, %v100_v1 }
 0x18c   :  { %v299_v4 = vld [vmem:[#allocation2 + $0x48] sm:$0xff] }
 0x18d   :  { %281 = vst.msk [vmem:[#allocation2 + $0x50] sm:$0xff] %vm69_vm1, %v264_v3  ;;  %488 = vmatmul.msk.f32.gmra.mxu2 %vm69_vm1, %v299_v4 }
 0x192   :  { %v239_v6 = vpop.f32.mrf.mxu3 }
 0x193   :  { %v265_v7 = vadd.f32 %v239_v6, %v101_v5 }
 0x194   :  { %v300_v8 = vld [vmem:[#allocation2 + $0x50] sm:$0xff] }
 0x195   :  { %282 = vst.msk [vmem:[#allocation2 + $0x58] sm:$0xff] %vm69_vm1, %v265_v7  ;;  %489 = vmatmul.msk.f32.gmra.mxu2 %vm69_vm1, %v300_v8 }
 0x19a   :  { %v242_v10 = vpop.f32.mrf.mxu3 }
 0x19b   :  { %v266_v11 = vadd.f32 %v242_v10, %v102_v9 }
 0x19c   :  { %v301_v12 = vld [vmem:[#allocation2 + $0x58] sm:$0xff] }
 0x19d   :  { %283 = vst.msk [vmem:[#allocation2 + $0x60] sm:$0xff] %vm69_vm1, %v266_v11  ;;  %490 = vmatmul.msk.f32.gmra.mxu2 %vm69_vm1, %v301_v12 }
 0x1a2   :  { %v245_v14 = vpop.f32.mrf.mxu3 }
 0x1a3   :  { %v267_v15 = vadd.f32 %v245_v14, %v103_v13 }
 0x1a4   :  { %v302_v16 = vld [vmem:[#allocation2 + $0x60] sm:$0xff] }
 0x1a5   :  { %284 = vst.msk [vmem:[#allocation2 + $0x68] sm:$0xff] %vm69_vm1, %v267_v15  ;;  %491 = vmatmul.msk.f32.gmra.mxu2 %vm69_vm1, %v302_v16 }
 0x1aa   :  { %v248_v18 = vpop.f32.mrf.mxu3 }
 0x1ab   :  { %v268_v19 = vadd.f32 %v248_v18, %v104_v17 }
 0x1ac   :  { %v303_v20 = vld [vmem:[#allocation2 + $0x68] sm:$0xff] }
 0x1ad   :  { %285 = vst.msk [vmem:[#allocation2 + $0x70] sm:$0xff] %vm69_vm1, %v268_v19  ;;  %492 = vmatmul.msk.f32.gmra.mxu2 %vm69_vm1, %v303_v20 }
 0x1b2   :  { %v251_v22 = vpop.f32.mrf.mxu3 }
 0x1b3   :  { %v269_v23 = vadd.f32 %v251_v22, %v105_v21 }
 0x1b4   :  { %v304_v24 = vld [vmem:[#allocation2 + $0x70] sm:$0xff] }
 0x1b5   :  { %286 = vst.msk [vmem:[#allocation2 + $0x78] sm:$0xff] %vm69_vm1, %v269_v23  ;;  %493 = vmatmul.msk.f32.gmra.mxu2 %vm69_vm1, %v304_v24 }
 0x1bc   :  { %v379_v26 = vpop.f32.mrf.mxu1  ;;  %v305_v27 = vld [vmem:[#allocation2 + $0x78] sm:$0xff] }
 0x1bd   :  { %v380_v28 = vadd.f32 %v514_v25, %v379_v26  ;;  %494 = vmatmul.msk.f32.gmra.mxu2 %vm69_vm1, %v305_v27 }
 0x1bf   :  { %427 = vst [vmem:[#allocation9] sm:$0xff] %v380_v28 }
 0x1c4   :  { %v382_v29 = vpop.f32.mrf.mxu1 }
 0x1c5   :  { %v383_v30 = vadd.f32 %v514_v25, %v382_v29 }
 0x1c7   :  { %428 = vst [vmem:[#allocation9 + $0x8] sm:$0xff] %v383_v30 }
 0x1cc   :  { %v385_v31 = vpop.f32.mrf.mxu1 }
 0x1cd   :  { %v386_v32 = vadd.f32 %v514_v25, %v385_v31 }
 0x1cf   :  { %429 = vst [vmem:[#allocation9 + $0x10] sm:$0xff] %v386_v32 }
 0x1d4   :  { %v388_v33 = vpop.f32.mrf.mxu1 }
 0x1d5   :  { %v389_v34 = vadd.f32 %v514_v25, %v388_v33 }
 0x1d7   :  { %430 = vst [vmem:[#allocation9 + $0x18] sm:$0xff] %v389_v34 }
 0x1dc   :  { %v391_v35 = vpop.f32.mrf.mxu1 }
 0x1dd   :  { %v392_v36 = vadd.f32 %v514_v25, %v391_v35 }
 0x1df   :  { %431 = vst [vmem:[#allocation9 + $0x20] sm:$0xff] %v392_v36 }
 0x1e4   :  { %v394_v37 = vpop.f32.mrf.mxu1 }
 0x1e5   :  { %v395_v38 = vadd.f32 %v514_v25, %v394_v37 }
 0x1e7   :  { %432 = vst [vmem:[#allocation9 + $0x28] sm:$0xff] %v395_v38 }
 0x1ec   :  { %v397_v39 = vpop.f32.mrf.mxu1 }
 0x1ed   :  { %v398_v40 = vadd.f32 %v514_v25, %v397_v39 }
 0x1ef   :  { %433 = vst [vmem:[#allocation9 + $0x30] sm:$0xff] %v398_v40 }
 0x1f4   :  { %v400_v41 = vpop.f32.mrf.mxu1 }
 0x1f5   :  { %v401_v42 = vadd.f32 %v514_v25, %v400_v41 }
 0x1f7   :  { %434 = vst [vmem:[#allocation9 + $0x38] sm:$0xff] %v401_v42 }
 0x202   :  { %v403_v43 = vpop.f32.mrf.mxu2 }
 0x203   :  { %v404_v44 = vadd.f32 %v514_v25, %v403_v43 }
 0x205   :  { %435 = vst [vmem:[#allocation9 + $0x40] sm:$0xff] %v404_v44 }
 0x210   :  { %v406_v45 = vpop.f32.mrf.mxu2 }
 0x211   :  { %v407_v46 = vadd.f32 %v514_v25, %v406_v45 }
 0x213   :  { %436 = vst [vmem:[#allocation9 + $0x48] sm:$0xff] %v407_v46 }
 0x218   :  { %v409_v47 = vpop.f32.mrf.mxu2 }
 0x219   :  { %v410_v48 = vadd.f32 %v514_v25, %v409_v47 }
 0x21b   :  { %437 = vst [vmem:[#allocation9 + $0x50] sm:$0xff] %v410_v48 }
 0x220   :  { %v412_v49 = vpop.f32.mrf.mxu2 }
 0x221   :  { %v413_v50 = vadd.f32 %v514_v25, %v412_v49 }
 0x223   :  { %438 = vst [vmem:[#allocation9 + $0x58] sm:$0xff] %v413_v50 }
 0x228   :  { %v415_v51 = vpop.f32.mrf.mxu2 }
 0x229   :  { %v416_v52 = vadd.f32 %v514_v25, %v415_v51 }
 0x22b   :  { %439 = vst [vmem:[#allocation9 + $0x60] sm:$0xff] %v416_v52 }
 0x230   :  { %v418_v53 = vpop.f32.mrf.mxu2 }
 0x231   :  { %v419_v54 = vadd.f32 %v514_v25, %v418_v53 }
 0x233   :  { %440 = vst [vmem:[#allocation9 + $0x68] sm:$0xff] %v419_v54 }
 0x238   :  { %v421_v55 = vpop.f32.mrf.mxu2 }
 0x239   :  { %v422_v56 = vadd.f32 %v514_v25, %v421_v55 }
 0x23b   :  { %441 = vst [vmem:[#allocation9 + $0x70] sm:$0xff] %v422_v56 }
 0x240   :  { %v424_v57 = vpop.f32.mrf.mxu2 }
 0x241   :  { %v425_v58 = vadd.f32 %v514_v25, %v424_v57 }
 0x243   :  { %442 = vst [vmem:[#allocation9 + $0x78] sm:$0xff] %v425_v58 }
 0x244   :  { %455 = dma.vmem_to_hbm [thread:$0]  %s448_s7, 2048, %s450_s10, [#allocation5], %s618_s23, %s618_s23, %s619_s24  }
 0x245   :  { %615 = dma.done.wait [#allocation5], 2048  }
 0x246   :  { %616 = vsyncadd [#allocation5], 4294965248 }
 0x247   :  { %460 = vsyncpa [#allocation4], 1 }
 0x248   :  { %461 = vsyncpa [#allocation7], 1 }
 0x249   :  { %462 = vsyncpa [#allocation5], 1 }

</bundles_post_ra>
